<compile_context>
chip_gen: v5e
topology: v5e:2x2
jax: 0.10.0
libtpu: 0.0.40
codegen_flags: <defaults>
</compile_context>

<pallas_src>
import functools

import jax
import jax.numpy as jnp
from jax.experimental import pallas as pl
from jax.experimental.pallas import tpu as pltpu


# ---------------------------------------------------------------------------
# Fused Pallas kernel: conv3x3+BN+SiLU -> conv3x3+BN+SiLU (+ residual),
# one batch element per grid step, everything in a (C, H*W) lane-dense layout.
# ---------------------------------------------------------------------------
def _bottleneck_kernel(x_ref, w1_ref, w2_ref, o_ref, *, H, W, add_residual):
    # x_ref : (1, C1, H*W)        input image, flattened spatial on lanes
    # w1_ref: (C_, 9*C1 + 1)      cv1 weights (BN + bias folded, im2col order)
    # w2_ref: (C2, 9*C_ + 1)      cv2 weights (BN + bias folded, im2col order)
    # o_ref : (1, C2, H*W)
    HW = H * W
    P = W + 1  # max |flat shift| of a 3x3 tap in h*W + w indexing

    x = x_ref[0].astype(jnp.float32)  # (C1, HW)

    # Column index within each image row; masks the horizontal (W) wrap of the
    # flat shifts.  Vertical (H) borders fall into the zero padding below.
    w_idx = jax.lax.broadcasted_iota(jnp.int32, (1, HW), 1) % W
    left_ok = w_idx >= 1          # valid output positions for a dw = -1 tap
    right_ok = w_idx <= W - 2     # valid output positions for a dw = +1 tap
    ones_row = jnp.ones((1, HW), jnp.float32)

    def im2col(a):
        """(C, HW) -> (9*C + 1, HW): the 9 taps as lane shifts + bias ones-row."""
        C = a.shape[0]
        zpad = jnp.zeros((C, P), jnp.float32)
        a_pad = jnp.concatenate([zpad, a, zpad], axis=1)   # (C, HW + 2P)
        rows = []
        for dh in (-1, 0, 1):
            for dw in (-1, 0, 1):
                s = dh * W + dw                  # flat index shift of this tap
                t = a_pad[:, P + s:P + s + HW]   # t[:, p] = a[:, p + s] (0 outside)
                if dw == -1:
                    t = jnp.where(left_ok, t, 0.0)
                elif dw == 1:
                    t = jnp.where(right_ok, t, 0.0)
                rows.append(t)
        rows.append(ones_row)                    # pairs with the bias column
        return jnp.concatenate(rows, axis=0)     # (9*C + 1, HW)

    # cv1: conv3x3 + BN + SiLU  (single MXU matmul, K = 9*C1 + 1)
    y1 = jnp.dot(w1_ref[...], im2col(x),
                 preferred_element_type=jnp.float32,
                 precision=jax.lax.Precision.HIGHEST)
    h = y1 * jax.nn.sigmoid(y1)                  # SiLU (sigmoid -> EUP slot)

    # cv2: conv3x3 + BN + SiLU  (single MXU matmul, K = 9*C_ + 1)
    y2 = jnp.dot(w2_ref[...], im2col(h),
                 preferred_element_type=jnp.float32,
                 precision=jax.lax.Precision.HIGHEST)
    y2 = y2 * jax.nn.sigmoid(y2)

    if add_residual:
        y2 = y2 + x                              # residual from the resident block

    o_ref[0] = y2.astype(o_ref.dtype)


def bottleneck_forward(x_nchw, params, shortcut=True):
    """Matches Bottleneck.forward: x + cv2(cv1(x)) if shortcut and c1 == c2."""
    N, C1, H, W = x_nchw.shape
    w1 = params["cv1"]["mat"]       # (C_, 9*C1 + 1)
    w2 = params["cv2"]["mat"]       # (C2, 9*C_ + 1)
    C_, C2 = w1.shape[0], w2.shape[0]
    HW = H * W
    add = bool(shortcut) and (C1 == C2)

    # NCHW -> (N, C, H*W) is a free row-major reshape (no transpose, no pad).
    x_flat = x_nchw.reshape(N, C1, HW)

    kernel = functools.partial(_bottleneck_kernel, H=H, W=W, add_residual=add)

    # NOTE: at realistic YOLO resolutions, tile H into strips with a 1-row halo
    # (and budget against v7x's 64 MiB VMEM); at these shapes one full image per
    # grid step fits comfortably and gives lane width 256 (matches 2x256 MXU).
    out = pl.pallas_call(
        kernel,
        out_shape=jax.ShapeDtypeStruct((N, C2, HW), x_nchw.dtype),
        grid=(N,),
        in_specs=[
            pl.BlockSpec((1, C1, HW), lambda n: (n, 0, 0)),
            pl.BlockSpec((C_, 9 * C1 + 1), lambda n: (0, 0)),
            pl.BlockSpec((C2, 9 * C_ + 1), lambda n: (0, 0)),
        ],
        out_specs=pl.BlockSpec((1, C2, HW), lambda n: (n, 0, 0)),
        compiler_params=pltpu.CompilerParams(dimension_semantics=("parallel",)),
    )(x_flat, w1, w2)

    return out.reshape(N, C2, H, W)


# ---------------------------------------------------------------------------
# Parameter setup (plain JAX glue): fold inference-mode BatchNorm + bias into
# a single (Cout, 9*Cin + 1) matmul matrix matching the kernel's im2col order.
# ---------------------------------------------------------------------------
def fold_conv_bn(w_oihw, gamma, beta, running_mean, running_var, eps=1e-5):
    scale = gamma / jnp.sqrt(running_var + eps)            # (Cout,)
    w = w_oihw * scale[:, None, None, None]                # (Cout, Cin, 3, 3)
    b = beta - running_mean * scale                        # (Cout,)
    # Column order (kh, kw, cin) matches the kernel im2col row order; the
    # trailing bias column pairs with the kernel's ones-row.
    w_mat = jnp.transpose(w, (0, 2, 3, 1)).reshape(w.shape[0], -1)
    mat = jnp.concatenate([w_mat, b[:, None]], axis=1)     # (Cout, 9*Cin + 1)
    return {"w": w, "b": b, "mat": mat}


def make_bottleneck_params(key, c1, c2, e=0.5):
    c_ = int(c2 * e)
    k = jax.random.split(key, 10)

    w1 = 0.1 * jax.random.normal(k[0], (c_, c1, 3, 3), jnp.float32)
    g1 = 1.0 + 0.1 * jax.random.normal(k[1], (c_,), jnp.float32)
    b1 = 0.1 * jax.random.normal(k[2], (c_,), jnp.float32)
    m1 = 0.05 * jax.random.normal(k[3], (c_,), jnp.float32)
    v1 = 1.0 + 0.1 * jnp.abs(jax.random.normal(k[4], (c_,), jnp.float32))

    w2 = 0.1 * jax.random.normal(k[5], (c2, c_, 3, 3), jnp.float32)
    g2 = 1.0 + 0.1 * jax.random.normal(k[6], (c2,), jnp.float32)
    b2 = 0.1 * jax.random.normal(k[7], (c2,), jnp.float32)
    m2 = 0.05 * jax.random.normal(k[8], (c2,), jnp.float32)
    v2 = 1.0 + 0.1 * jnp.abs(jax.random.normal(k[9], (c2,), jnp.float32))

    return {"cv1": fold_conv_bn(w1, g1, b1, m1, v1),
            "cv2": fold_conv_bn(w2, g2, b2, m2, v2)}


# ---------------------------------------------------------------------------
# Pure-JAX reference (for correctness check against the Pallas path).
# ---------------------------------------------------------------------------
def _ref_conv_bn_silu(x_nchw, w_oihw, b):
    y = jax.lax.conv_general_dilated(
        x_nchw, w_oihw, window_strides=(1, 1), padding=((1, 1), (1, 1)),
        dimension_numbers=("NCHW", "OIHW", "NCHW"),
        precision=jax.lax.Precision.HIGHEST,
    ) + b[None, :, None, None]
    return y * jax.nn.sigmoid(y)


def _ref_bottleneck(x_nchw, params, shortcut=True):
    c1 = x_nchw.shape[1]
    c2 = params["cv2"]["w"].shape[0]
    h = _ref_conv_bn_silu(x_nchw, params["cv1"]["w"], params["cv1"]["b"])
    y = _ref_conv_bn_silu(h, params["cv2"]["w"], params["cv2"]["b"])
    if shortcut and c1 == c2:
        y = y + x_nchw
    return y


if __name__ == "__main__":
    key = jax.random.PRNGKey(0)
    kx, kp = jax.random.split(key)

    # Small shapes consistent with the module: Bottleneck(c1=4, c2=4, e=0.5)
    N, C, H, W = 2, 4, 16, 16
    x = jax.random.normal(kx, (N, C, H, W), jnp.float32)
    params = make_bottleneck_params(kp, c1=C, c2=C, e=0.5)

    out = bottleneck_forward(x, params, shortcut=True)
    out = jax.block_until_ready(out)

    ref = _ref_bottleneck(x, params, shortcut=True)
    assert out.shape == (N, C, H, W)
    assert jnp.allclose(out, ref, atol=1e-4, rtol=1e-4), float(
        jnp.max(jnp.abs(out - ref)))

    print("KERNEL_OK")
</pallas_src>

<mosaic_0001>
module attributes {stable_mosaic.version = 11 : i64} {
  func.func @_bottleneck_kernel(%arg0: i32, %arg1: memref<1x4x256xf32, #tpu.memory_space<vmem>>, %arg2: memref<2x37xf32, #tpu.memory_space<vmem>>, %arg3: memref<4x19xf32, #tpu.memory_space<vmem>>, %arg4: memref<1x4x256xf32, #tpu.memory_space<vmem>>) attributes {dimension_semantics = [#tpu.dimension_semantics<parallel>], iteration_bounds = array<i64: 2>, scalar_prefetch = 0 : i64, scratch_operands = 0 : i64, tpu.core_type = #tpu.core_type<tc>, window_params = [{transform_indices = @transform_0, window_bounds = array<i64: 1, 4, 256>}, {pipeline_mode = #tpu.pipeline_mode<synchronous>, transform_indices = @transform_1, window_bounds = array<i64: 2, 37>}, {pipeline_mode = #tpu.pipeline_mode<synchronous>, transform_indices = @transform_2, window_bounds = array<i64: 4, 19>}, {transform_indices = @transform_3, window_bounds = array<i64: 1, 4, 256>}]} {
    %c0 = arith.constant 0 : index
    %c0_0 = arith.constant 0 : index
    %c0_1 = arith.constant 0 : index
    %0 = vector.load %arg1[%c0, %c0_0, %c0_1] : memref<1x4x256xf32, #tpu.memory_space<vmem>>, vector<1x4x256xf32>
    %1 = vector.shape_cast %0 : vector<1x4x256xf32> to vector<4x256xf32>
    %2 = tpu.iota {dimensions = array<i32: 1>} : vector<1x256xi32>
    %c16_i32 = arith.constant 16 : i32
    %c0_i32 = arith.constant 0 : i32
    %3 = arith.cmpi eq, %c16_i32, %c0_i32 : i32
    %c1_i32 = arith.constant 1 : i32
    %4 = arith.select %3, %c1_i32, %c16_i32 : i32
    %5 = vector.broadcast %4 : i32 to vector<1x256xi32>
    %6 = arith.remsi %2, %5 : vector<1x256xi32>
    %c0_i32_2 = arith.constant 0 : i32
    %7 = vector.broadcast %c0_i32_2 : i32 to vector<1x256xi32>
    %8 = arith.cmpi ne, %6, %7 : vector<1x256xi32>
    %c0_i32_3 = arith.constant 0 : i32
    %9 = vector.broadcast %c0_i32_3 : i32 to vector<1x256xi32>
    %10 = arith.cmpi slt, %6, %9 : vector<1x256xi32>
    %c0_i32_4 = arith.constant 0 : i32
    %11 = arith.cmpi slt, %4, %c0_i32_4 : i32
    %12 = vector.broadcast %11 : i1 to vector<1x256xi1>
    %13 = vector.broadcast %12 : vector<1x256xi1> to vector<1x256xi1>
    %14 = arith.xori %10, %13 : vector<1x256xi1>
    %15 = arith.andi %14, %8 : vector<1x256xi1>
    %16 = vector.broadcast %4 : i32 to vector<1x256xi32>
    %17 = arith.addi %6, %16 : vector<1x256xi32>
    %18 = arith.select %15, %17, %6 : vector<1x256xi1>, vector<1x256xi32>
    %c1_i32_5 = arith.constant 1 : i32
    %19 = vector.broadcast %c1_i32_5 : i32 to vector<1x256xi32>
    %20 = arith.cmpi sge, %18, %19 : vector<1x256xi32>
    %c14_i32 = arith.constant 14 : i32
    %21 = vector.broadcast %c14_i32 : i32 to vector<1x256xi32>
    %22 = arith.cmpi sle, %18, %21 : vector<1x256xi32>
    %cst = arith.constant 1.000000e+00 : f32
    %23 = vector.broadcast %cst : f32 to vector<1x256xf32>
    %c0_6 = arith.constant 0 : index
    %c0_7 = arith.constant 0 : index
    %24 = vector.load %arg2[%c0_6, %c0_7] : memref<2x37xf32, #tpu.memory_space<vmem>>, vector<2x37xf32>
    %cst_8 = arith.constant 0.000000e+00 : f32
    %25 = vector.broadcast %cst_8 : f32 to vector<4x17xf32>
    %26 = tpu.concatenate %25, %1, %25 in 1 : vector<4x17xf32>, vector<4x256xf32>, vector<4x17xf32> -> vector<4x290xf32>
    %27 = vector.extract_strided_slice %26 {offsets = [0, 0], sizes = [4, 256], strides = [1, 1]} : vector<4x290xf32> to vector<4x256xf32>
    %cst_9 = arith.constant 0.000000e+00 : f32
    %28 = vector.shape_cast %20 : vector<1x256xi1> to vector<1x256xi1>
    %29 = vector.broadcast %28 : vector<1x256xi1> to vector<4x256xi1>
    %30 = vector.broadcast %cst_9 : f32 to vector<4x256xf32>
    %31 = arith.select %29, %27, %30 : vector<4x256xi1>, vector<4x256xf32>
    %32 = vector.extract_strided_slice %26 {offsets = [0, 1], sizes = [4, 256], strides = [1, 1]} : vector<4x290xf32> to vector<4x256xf32>
    %33 = vector.extract_strided_slice %26 {offsets = [0, 2], sizes = [4, 256], strides = [1, 1]} : vector<4x290xf32> to vector<4x256xf32>
    %cst_10 = arith.constant 0.000000e+00 : f32
    %34 = vector.shape_cast %22 : vector<1x256xi1> to vector<1x256xi1>
    %35 = vector.broadcast %34 : vector<1x256xi1> to vector<4x256xi1>
    %36 = vector.broadcast %cst_10 : f32 to vector<4x256xf32>
    %37 = arith.select %35, %33, %36 : vector<4x256xi1>, vector<4x256xf32>
    %38 = vector.extract_strided_slice %26 {offsets = [0, 16], sizes = [4, 256], strides = [1, 1]} : vector<4x290xf32> to vector<4x256xf32>
    %cst_11 = arith.constant 0.000000e+00 : f32
    %39 = vector.shape_cast %20 : vector<1x256xi1> to vector<1x256xi1>
    %40 = vector.broadcast %39 : vector<1x256xi1> to vector<4x256xi1>
    %41 = vector.broadcast %cst_11 : f32 to vector<4x256xf32>
    %42 = arith.select %40, %38, %41 : vector<4x256xi1>, vector<4x256xf32>
    %43 = vector.extract_strided_slice %26 {offsets = [0, 17], sizes = [4, 256], strides = [1, 1]} : vector<4x290xf32> to vector<4x256xf32>
    %44 = vector.extract_strided_slice %26 {offsets = [0, 18], sizes = [4, 256], strides = [1, 1]} : vector<4x290xf32> to vector<4x256xf32>
    %cst_12 = arith.constant 0.000000e+00 : f32
    %45 = vector.shape_cast %22 : vector<1x256xi1> to vector<1x256xi1>
    %46 = vector.broadcast %45 : vector<1x256xi1> to vector<4x256xi1>
    %47 = vector.broadcast %cst_12 : f32 to vector<4x256xf32>
    %48 = arith.select %46, %44, %47 : vector<4x256xi1>, vector<4x256xf32>
    %49 = vector.extract_strided_slice %26 {offsets = [0, 32], sizes = [4, 256], strides = [1, 1]} : vector<4x290xf32> to vector<4x256xf32>
    %cst_13 = arith.constant 0.000000e+00 : f32
    %50 = vector.shape_cast %20 : vector<1x256xi1> to vector<1x256xi1>
    %51 = vector.broadcast %50 : vector<1x256xi1> to vector<4x256xi1>
    %52 = vector.broadcast %cst_13 : f32 to vector<4x256xf32>
    %53 = arith.select %51, %49, %52 : vector<4x256xi1>, vector<4x256xf32>
    %54 = vector.extract_strided_slice %26 {offsets = [0, 33], sizes = [4, 256], strides = [1, 1]} : vector<4x290xf32> to vector<4x256xf32>
    %55 = vector.extract_strided_slice %26 {offsets = [0, 34], sizes = [4, 256], strides = [1, 1]} : vector<4x290xf32> to vector<4x256xf32>
    %cst_14 = arith.constant 0.000000e+00 : f32
    %56 = vector.shape_cast %22 : vector<1x256xi1> to vector<1x256xi1>
    %57 = vector.broadcast %56 : vector<1x256xi1> to vector<4x256xi1>
    %58 = vector.broadcast %cst_14 : f32 to vector<4x256xf32>
    %59 = arith.select %57, %55, %58 : vector<4x256xi1>, vector<4x256xf32>
    %60 = tpu.concatenate %31, %32, %37, %42, %43, %48, %53, %54, %59, %23 in 0 : vector<4x256xf32>, vector<4x256xf32>, vector<4x256xf32>, vector<4x256xf32>, vector<4x256xf32>, vector<4x256xf32>, vector<4x256xf32>, vector<4x256xf32>, vector<4x256xf32>, vector<1x256xf32> -> vector<37x256xf32>
    %cst_15 = arith.constant dense<0.000000e+00> : vector<2x256xf32>
    %61 = tpu.matmul %24, %60, %cst_15 {dimension_numbers = #tpu.dot_dimension_numbers<[1], [0], [0], [1], [0, 0, 1, 1], [], []>, precision = #tpu.contract_precision<fp32>} : vector<2x37xf32>, vector<37x256xf32>, vector<2x256xf32> -> vector<2x256xf32>
    %62 = arith.negf %61 : vector<2x256xf32>
    %63 = math.exp %62 : vector<2x256xf32>
    %cst_16 = arith.constant 1.000000e+00 : f32
    %64 = vector.broadcast %cst_16 : f32 to vector<2x256xf32>
    %65 = arith.addf %64, %63 : vector<2x256xf32>
    %66 = arith.divf %64, %65 : vector<2x256xf32>
    %67 = arith.mulf %61, %66 : vector<2x256xf32>
    %c0_17 = arith.constant 0 : index
    %c0_18 = arith.constant 0 : index
    %68 = vector.load %arg3[%c0_17, %c0_18] : memref<4x19xf32, #tpu.memory_space<vmem>>, vector<4x19xf32>
    %cst_19 = arith.constant 0.000000e+00 : f32
    %69 = vector.broadcast %cst_19 : f32 to vector<2x17xf32>
    %70 = tpu.concatenate %69, %67, %69 in 1 : vector<2x17xf32>, vector<2x256xf32>, vector<2x17xf32> -> vector<2x290xf32>
    %71 = vector.extract_strided_slice %70 {offsets = [0, 0], sizes = [2, 256], strides = [1, 1]} : vector<2x290xf32> to vector<2x256xf32>
    %cst_20 = arith.constant 0.000000e+00 : f32
    %72 = vector.shape_cast %20 : vector<1x256xi1> to vector<1x256xi1>
    %73 = vector.broadcast %72 : vector<1x256xi1> to vector<2x256xi1>
    %74 = vector.broadcast %cst_20 : f32 to vector<2x256xf32>
    %75 = arith.select %73, %71, %74 : vector<2x256xi1>, vector<2x256xf32>
    %76 = vector.extract_strided_slice %70 {offsets = [0, 1], sizes = [2, 256], strides = [1, 1]} : vector<2x290xf32> to vector<2x256xf32>
    %77 = vector.extract_strided_slice %70 {offsets = [0, 2], sizes = [2, 256], strides = [1, 1]} : vector<2x290xf32> to vector<2x256xf32>
    %cst_21 = arith.constant 0.000000e+00 : f32
    %78 = vector.shape_cast %22 : vector<1x256xi1> to vector<1x256xi1>
    %79 = vector.broadcast %78 : vector<1x256xi1> to vector<2x256xi1>
    %80 = vector.broadcast %cst_21 : f32 to vector<2x256xf32>
    %81 = arith.select %79, %77, %80 : vector<2x256xi1>, vector<2x256xf32>
    %82 = vector.extract_strided_slice %70 {offsets = [0, 16], sizes = [2, 256], strides = [1, 1]} : vector<2x290xf32> to vector<2x256xf32>
    %cst_22 = arith.constant 0.000000e+00 : f32
    %83 = vector.shape_cast %20 : vector<1x256xi1> to vector<1x256xi1>
    %84 = vector.broadcast %83 : vector<1x256xi1> to vector<2x256xi1>
    %85 = vector.broadcast %cst_22 : f32 to vector<2x256xf32>
    %86 = arith.select %84, %82, %85 : vector<2x256xi1>, vector<2x256xf32>
    %87 = vector.extract_strided_slice %70 {offsets = [0, 17], sizes = [2, 256], strides = [1, 1]} : vector<2x290xf32> to vector<2x256xf32>
    %88 = vector.extract_strided_slice %70 {offsets = [0, 18], sizes = [2, 256], strides = [1, 1]} : vector<2x290xf32> to vector<2x256xf32>
    %cst_23 = arith.constant 0.000000e+00 : f32
    %89 = vector.shape_cast %22 : vector<1x256xi1> to vector<1x256xi1>
    %90 = vector.broadcast %89 : vector<1x256xi1> to vector<2x256xi1>
    %91 = vector.broadcast %cst_23 : f32 to vector<2x256xf32>
    %92 = arith.select %90, %88, %91 : vector<2x256xi1>, vector<2x256xf32>
    %93 = vector.extract_strided_slice %70 {offsets = [0, 32], sizes = [2, 256], strides = [1, 1]} : vector<2x290xf32> to vector<2x256xf32>
    %cst_24 = arith.constant 0.000000e+00 : f32
    %94 = vector.shape_cast %20 : vector<1x256xi1> to vector<1x256xi1>
    %95 = vector.broadcast %94 : vector<1x256xi1> to vector<2x256xi1>
    %96 = vector.broadcast %cst_24 : f32 to vector<2x256xf32>
    %97 = arith.select %95, %93, %96 : vector<2x256xi1>, vector<2x256xf32>
    %98 = vector.extract_strided_slice %70 {offsets = [0, 33], sizes = [2, 256], strides = [1, 1]} : vector<2x290xf32> to vector<2x256xf32>
    %99 = vector.extract_strided_slice %70 {offsets = [0, 34], sizes = [2, 256], strides = [1, 1]} : vector<2x290xf32> to vector<2x256xf32>
    %cst_25 = arith.constant 0.000000e+00 : f32
    %100 = vector.shape_cast %22 : vector<1x256xi1> to vector<1x256xi1>
    %101 = vector.broadcast %100 : vector<1x256xi1> to vector<2x256xi1>
    %102 = vector.broadcast %cst_25 : f32 to vector<2x256xf32>
    %103 = arith.select %101, %99, %102 : vector<2x256xi1>, vector<2x256xf32>
    %104 = tpu.concatenate %75, %76, %81, %86, %87, %92, %97, %98, %103, %23 in 0 : vector<2x256xf32>, vector<2x256xf32>, vector<2x256xf32>, vector<2x256xf32>, vector<2x256xf32>, vector<2x256xf32>, vector<2x256xf32>, vector<2x256xf32>, vector<2x256xf32>, vector<1x256xf32> -> vector<19x256xf32>
    %cst_26 = arith.constant dense<0.000000e+00> : vector<4x256xf32>
    %105 = tpu.matmul %68, %104, %cst_26 {dimension_numbers = #tpu.dot_dimension_numbers<[1], [0], [0], [1], [0, 0, 1, 1], [], []>, precision = #tpu.contract_precision<fp32>} : vector<4x19xf32>, vector<19x256xf32>, vector<4x256xf32> -> vector<4x256xf32>
    %106 = arith.negf %105 : vector<4x256xf32>
    %107 = math.exp %106 : vector<4x256xf32>
    %cst_27 = arith.constant 1.000000e+00 : f32
    %108 = vector.broadcast %cst_27 : f32 to vector<4x256xf32>
    %109 = arith.addf %108, %107 : vector<4x256xf32>
    %110 = arith.divf %108, %109 : vector<4x256xf32>
    %111 = arith.mulf %105, %110 : vector<4x256xf32>
    %112 = arith.addf %111, %1 : vector<4x256xf32>
    %c0_28 = arith.constant 0 : index
    %c0_29 = arith.constant 0 : index
    %c0_30 = arith.constant 0 : index
    %113 = vector.load %arg4[%c0_28, %c0_29, %c0_30] : memref<1x4x256xf32, #tpu.memory_space<vmem>>, vector<1x4x256xf32>
    %114 = vector.shape_cast %113 : vector<1x4x256xf32> to vector<4x256xf32>
    %115 = vector.shape_cast %112 : vector<4x256xf32> to vector<1x4x256xf32>
    tpu.vector_store %arg4[%c0_28, %c0_29, %c0_30], %115 {strides = array<i32>} : memref<1x4x256xf32, #tpu.memory_space<vmem>>, vector<1x4x256xf32>,
    return
  }
  func.func @transform_0(%arg0: i32) -> (i32, i32, i32) {
    %c0_i32 = arith.constant 0 : i32
    %c0_i32_0 = arith.constant 0 : i32
    %c0_i32_1 = arith.constant 0 : i32
    return %arg0, %c0_i32, %c0_i32_0 : i32, i32, i32
  }
  func.func @transform_1(%arg0: i32) -> (i32, i32) {
    %c0_i32 = arith.constant 0 : i32
    %c0_i32_0 = arith.constant 0 : i32
    %c0_i32_1 = arith.constant 0 : i32
    return %c0_i32, %c0_i32_0 : i32, i32
  }
  func.func @transform_2(%arg0: i32) -> (i32, i32) {
    %c0_i32 = arith.constant 0 : i32
    %c0_i32_0 = arith.constant 0 : i32
    %c0_i32_1 = arith.constant 0 : i32
    return %c0_i32, %c0_i32_0 : i32, i32
  }
  func.func @transform_3(%arg0: i32) -> (i32, i32, i32) {
    %c0_i32 = arith.constant 0 : i32
    %c0_i32_0 = arith.constant 0 : i32
    %c0_i32_1 = arith.constant 0 : i32
    return %arg0, %c0_i32, %c0_i32_0 : i32, i32, i32
  }
}

</mosaic_0001>

<bundles_post_ra>
// kernel: tpu_custom_call.1
= control target key start
LH: loop header
LB: loop body
LE: loop exit
PB: predicated region body
PF: predicated region fallthrough
CT: control target
= control target key end

     0   :  { %8 = vsyncpa [#allocation3], 0  ;;  %s2401_s0 = inlined_call_operand.hbm [shape: f32[2,4,256], index: 0, kind: input, shape index: {}]   ;;  %s2402_s1 = inlined_call_operand.hbm [shape: f32[2,37], index: 1, kind: input, shape index: {}]   ;;  %s2403_s2 = inlined_call_operand.hbm [shape: f32[4,19], index: 2, kind: input, shape index: {}]   ;;  %s2404_s3 = inlined_call_operand.hbm [shape: f32[2,4,256], index: 3, kind: output, shape index: {}]  }
   0x1   :  { %10 = vsyncpa [#allocation3 + $0x1], 0 }
   0x2   :  { %11 = vsyncpa [#allocation6], 0 }
   0x3   :  { %12 = vsyncpa [#allocation4], 0 }
   0x4   :  { %14 = vsyncpa [#allocation4 + $0x1], 0  ;;  %s1825_s12 = smov 0   ;;  %s1827_s13 = smov 0  }
   0x5   :  { %s1829_s14 = smov 0   ;;  %s1831_s15 = smov 0  }
   0x6 LB: > { %s1846_s16 = sadd.s32 4294967295, %s1792_s15   ;;  %s1516_s17 = sadd.s32 4294967294, %s1792_s15   ;;  %s1792_s15 = sphi %s1831_s15, %s2440_s15   ;;  %s1788_s14 = sphi %s1829_s14, %s2439_s14   ;;  %s1784_s13 = sphi %s1827_s13, %s2438_s13   ;;  %s1780_s12 = sphi %s1825_s12, %s2437_s12  }
   0x7   : > { %p40_p0 = scmp.ne.s32.totalorder %s1784_s13, %s1780_s12  ;;  %p41_p1 = scmp.eq.s32.totalorder %s1846_s16, 0 }
   0x8   : > { %p106_p2 = scmp.eq.s32.totalorder %s1846_s16, 1  ;;  %p112_p3 = scmp.eq.s32.totalorder %s1516_s17, 1 }
   0x9   : > { %p1855_p4 = por %p41_p1, %p40_p0  ;;  %p1517_p5 = scmp.ge.s32.totalorder %s1792_s15, 1 }
   0xa   : > { %p1860_p6 = por %p112_p3, %p40_p0  ;;  %p119_p7 = scmp.lt.s32.totalorder %s1792_s15, 3 }
   0xb   : > { %s131_s22 = sshll.u32 %s2402_s1, 4  ;;  %s1794_s24 = smov [#allocation5]   ;;  %s132_s22 = int_to_ptr.hbm [resolvable:$true] %s131_s22 }
   0xc   : > { %p1868_p8 = pnand %p1517_p5, %p119_p7  ;;  %s133_s25 = sshll.u32 %s1794_s24, 4  ;;  %s134_s25 = int_to_ptr.vmem [resolvable:$true] %s133_s25 }
   0xd   : > { %s143_s28 = sshll.u32 %s2403_s2, 4  ;;  %s1795_s29 = smov [#allocation7]   ;;  %s144_s28 = int_to_ptr.hbm [resolvable:$true] %s143_s28 }
   0xe   : > { %p1552_p10 = pneg %p1868_p8  ;;  %s145_s30 = sshll.u32 %s1795_s29, 4  ;;  %s146_s30 = int_to_ptr.vmem [resolvable:$true] %s145_s30 }
   0xf   : > { %s1881_s4 = sadd.s32 1, %s1792_s15   ;;  %s27_s5 = sadd.s32 1, %s1788_s14 }
  0x10   : > { %p1553_p11 = pnand %p1552_p10, %p41_p1  ;;  %s24_s6 = ssub.s32 %s1792_s15, %s1881_s4 }
  0x11   : > { %p34_p12 = scmp.ne.s32.totalorder %s1788_s14, %s1784_s13  ;;  %p25_p13 = scmp.eq.s32.totalorder %s24_s6, 0 }
  0x12   : > { %1555 = dma.hbm_to_vmem [thread:$0]  (!%p1553_p11), %s132_s22, 32, %s134_s25, [#allocation6]  }
  0x13   : > { %1558 = dma.hbm_to_vmem [thread:$0]  (!%p1553_p11), %s144_s28, 64, %s146_s30, [#allocation6]  }
  0x14   : > { %p35_p0 = scmp.eq.s32.totalorder %s1792_s15, 0  ;;  %p1891_p3 = por %p106_p2, %p34_p12 }
  0x15   : > { %p1569_p5 = scmp.lt.s32.totalorder %s1792_s15, 2  ;;  %s156_s9 = sand.u32 1, %s1788_s14  }
  0x16   : > { %s1897_s8 = scalar_select %p25_p13, %s1788_s14, %s27_s5  }
  0x17   : > { %p36_p7 = por %p35_p0, %p34_p12  ;;  %s1521_s10 = sshll.u32 %s156_s9, 3 }
  0x18   : > { %s1538_s11 = sshll.u32 %s1792_s15, 3  ;;  %s160_s22 = scalar_lea.vmem [#allocation2], %s1521_s10 }
  0x19   : > { %s165_s21 = scalar_lea.hbm %s2401_s0, %s1538_s11  ;;  %s169_s24 = sshll.u32 %s160_s22, 4  ;;  %s170_s24 = int_to_ptr.vmem [resolvable:$true] %s169_s24 }
  0x1a   : > { %s167_s25 = sshll.u32 %s165_s21, 4  ;;  %p1904_p2 = pnand %p1569_p5, %p36_p7  ;;  %s168_s25 = int_to_ptr.hbm [resolvable:$true] %s167_s25 }
  0x1b   : > { %s157_s27 = scalar_lea.sflag [#allocation3], %s156_s9  ;;  %s1692_s28 = sshra.s32 %s168_s25, 4  ;;  %s1693_s28 = int_to_ptr.hbm [resolvable:$true] %s1692_s28 }
  0x1c   : > { %s1694_s29 = scalar_lea.hbm %s1693_s28, 8  ;;  %p1696_p11 = pneg %p1904_p2 }
  0x1d   : > { %p1695_p10 = scmp.ne.s32.totalorder %s1693_s28, %s1694_s29  ;;  %s1699_s6 = scalar_lea.hbm %s2401_s0, 16 }
  0x1e   : > { %p1700_p0 = scmp.lt.s32.totalorder %s1693_s28, %s2401_s0  ;;  %p1701_p5 = scmp.lt.s32.totalorder %s1699_s6, %s1694_s29 }
  0x1f   : > { %p1697_p12 = pnand %p1696_p11, %p1695_p10 }
  0x20   : > { %p1702_p7 = por %p1701_p5, %p1700_p0 }
  0x21   : > { %p1698_p13 = pneg %p1697_p12 }
  0x23   : > { %p1703_p9 = pnand %p1702_p7, %p1698_p13 }
  0x25   : > { %1706 = shalt.err (!%p1703_p9)
}
  0x26   : > { %1562 = dma.hbm_to_vmem [thread:$0]  (!%p1904_p2), %s168_s25, 128, %s170_s24, %s157_s27  }
  0x27   : > { %178 = sbr.rel (%p1868_p8) target bundleno = 1001 (0x3e9), region = 32  ;;  %s1921_s9 = sand.u32 (!%p1868_p8), 1, %s1784_s13  }
  0x28   : > { %s1525_s17 = sshll.u32 (!%p1868_p8), %s1921_s9, 3  ;;  %s181_s20 = scalar_lea.sflag (!%p1868_p8), [#allocation3], %s1921_s9 }
  0x29   : > { %s184_s21 = scalar_lea.vmem (!%p1868_p8), [#allocation2], %s1525_s17 }
  0x2c   : > { %1767 = dma.done.wait (%p1855_p4), %s181_s20, 128  }
  0x2d   : > { %1769 = vsyncadd (%p1855_p4), %s181_s20, 4294967168 }
  0x2e   : > { %1771 = dma.done.wait (%p41_p1), [#allocation6], 96  }
  0x2f   : > { %1773 = vsyncadd (%p41_p1), [#allocation6], 4294967200  ;;  %v218_v0 = vld [vmem:[%s184_s21] sm:$0xff]  ;;  %s1796_s23 = smov 17   ;;  %vm259_vm0 = vcmask 138240   ;;  %s1797_s18 = smov 96   ;;  %v219_v14 = vlaneseq }
  0x30   : > { %252 = vst [vmem:[#allocation1] ss:$2 sm:$0xff] %v218_v0  ;;  %s1798_s22 = smov 110   ;;  %s1799_s24 = smov 94   ;;  %vm336_vm1 = vcmask 769024   ;;  %vm2408_vm2 = vcmask 1043456  }
  0x31   : > { %s1800_s25 = smov 126   ;;  %s1801_s26 = smov 112   ;;  %v220_v18 = vand.u32 127, %v219_v14  ;;  %vm406_vm4 = vcmask 1044480   ;;  %vm2409_vm5 = vcmask 900096   ;;  %vm2407_vm6 = vcmask 785408  }
  0x32   : > { %s1802_s27 = smov 111   ;;  %s1803_s28 = smov 95   ;;  %vm2405_vm7 = vcmask 777216   ;;  %vm2406_vm8 = vcmask 908288   ;;  %vm297_vm11 = vcmask 916480   ;;  %vm402_vm12 = vcmask 302080  }
  0x33   : > { %s1804_s29 = smov 127   ;;  %v226_v19 = vand.u32 15, %v220_v18  ;;  %v221_v38 = vadd.s32 128, %v220_v18  ;;  %v250_v63 = vld [vmem:[#allocation5] sm:$0x3]  ;;  %vm284_vm13 = vcmask 1031168  }
  0x34   : > { %vm352_vm15 = vcmask 1039360   ;;  %s1539_s30 = sshll.u32 %s1846_s16, 3  ;;  %s217_s11 = scalar_lea.vmem [#allocation8], %s1525_s17 }
  0x35   : > { %vm1986_vm3 = vcmp.le.s32.totalorder %v226_v19, 14  ;;  %v233_v41 = vand.u32 15, %v221_v38  ;;  %vm2020_vm10 = vcmp.ge.s32.totalorder %v226_v19, 1  ;;  %s1422_s10 = scalar_lea.hbm %s2404_s3, %s1539_s30  ;;  %s1424_s16 = sshll.u32 %s217_s11, 4  ;;  %s1425_s16 = int_to_ptr.vmem [resolvable:$true] %s1424_s16 }
  0x36   : > { %s1426_s20 = sshll.u32 %s1422_s10, 4  ;;  %s1411_s21 = scalar_lea.sflag [#allocation4], %s1921_s9  ;;  %s1427_s20 = int_to_ptr.hbm [resolvable:$true] %s1426_s20 }
  0x37   : > { %v253_v1 = vld.sshfl [vmem:[#allocation1] sm:$0xff pattern:$0x75316420]  ;;  %v254_v2 = vld.sshfl [vmem:[#allocation1 + $0x8] sm:$0xff pattern:$0x75316420] }
  0x38   : > { %255 = vrot.lane.b32.xlu0 %v253_v1, %s1796_s23  ;;  %1397 = vst [vmem:[#allocation1] ss:$2 sm:$0xff] %v218_v0  ;;  %vm2015_vm9 = vcmp.le.s32.totalorder %v233_v41, 14  ;;  %vm2071_vm14 = vcmp.ge.s32.totalorder %v233_v41, 1  ;;  %s1742_s17 = scalar_lea.hbm %s2404_s3, 16 }
  0x40   : > { %257 = vrot.lane.b32.xlu0 %v254_v2, %s1796_s23 }
  0xaa   : > { %v256_v3 = vpop.permute.xlu0 %255 }
  0xab   : > { %v1938_v4 = vsel %vm259_vm0, 0.0, %v256_v3 }
  0xac   : > { %317 = vrot.lane.b32.xlu0 %v1938_v4, %s1797_s18  ;;  %304 = vrot.lane.b32.xlu2 %v1938_v4, %s1798_s22  ;;  %v343_v9 = vrot.slane %v1938_v4, 4 }
  0xad   : > { %330 = vrot.lane.b32.xlu1 %v1938_v4, %s1799_s24 }
  0xb2   : > { %v258_v5 = vpop.permute.xlu0 %257 }
  0xb3   : > { %v1947_v6 = vsel %vm259_vm0, %v256_v3, %v258_v5  ;;  %v265_v7 = vsel %vm259_vm0, %v258_v5, 0.0 }
  0xb4   : > { %334 = vrot.lane.b32.xlu0 %v265_v7, %s1799_s24  ;;  %306 = vrot.lane.b32.xlu2 %v1947_v6, %s1798_s22  ;;  %v344_v8 = vrot.slane %v1947_v6, 4  ;;  %v345_v10 = vrot.slane %v265_v7, 4 }
  0xb5   : > { %332 = vrot.lane.b32.xlu1 %v1947_v6, %s1799_s24 }
  0xbc   : > { %278 = vrot.lane.b32.xlu0 %v1938_v4, %s1800_s25  ;;  %293 = vrot.lane.b32.xlu2 %v1947_v6, %s1801_s26 }
  0xbd   : > { %319 = vrot.lane.b32.xlu1 %v1947_v6, %s1797_s18 }
  0xc4   : > { %321 = vrot.lane.b32.xlu0 %v265_v7, %s1797_s18  ;;  %365 = vrot.lane.b32.xlu2 %v1947_v6, %s1802_s27 }
  0xc5   : > { %291 = vrot.lane.b32.xlu1 %v1938_v4, %s1801_s26 }
  0xcc   : > { %308 = vrot.lane.b32.xlu2 %v265_v7, %s1798_s22  ;;  %382 = vrot.lane.b32.xlu0 %v344_v8, %s1803_s28 }
  0xcd   : > { %363 = vrot.lane.b32.xlu1 %v1938_v4, %s1802_s27 }
  0xd4   : > { %380 = vrot.lane.b32.xlu2 %v343_v9, %s1803_s28  ;;  %384 = vrot.lane.b32.xlu0 %v345_v10, %s1803_s28 }
  0xd5   : > { %280 = vrot.lane.b32.xlu1 %v1947_v6, %s1800_s25 }
  0xdc   : > { %348 = vrot.lane.b32.xlu2 %v344_v8, %s1804_s29  ;;  %282 = vrot.lane.b32.xlu0 %v265_v7, %s1800_s25 }
  0xdd   : > { %295 = vrot.lane.b32.xlu1 %v265_v7, %s1801_s26 }
  0xe4   : > { %367 = vrot.lane.b32.xlu2 %v265_v7, %s1802_s27 }
  0xe5   : > { %346 = vrot.lane.b32.xlu1 %v343_v9, %s1804_s29 }
  0xed   : > { %350 = vrot.lane.b32.xlu1 %v345_v10, %s1804_s29 }
 0x106   : > { %v305_v11 = vpop.permute.xlu2 %304 }
 0x10e   : > { %v307_v12 = vpop.permute.xlu2 %306 }
 0x10f   : > { %v311_v39 = vsel %vm2409_vm5, %v305_v11, %v307_v12 }
 0x110   : > { %v315_v40 = vsel %vm1986_vm3, %v311_v39, 0.0 }
 0x111   : > { %v376_v48 = vrot.slane %v315_v40, 4 }
 0x116   : > { %v1982_v13 = vpop.permute.xlu2 %293 }
 0x11e   : > { %v318_v15 = vpop.permute.xlu0 %317  ;;  %v1984_v17 = vpop.permute.xlu2 %365 }
 0x11f   : > { %v331_v16 = vpop.permute.xlu1 %330 }
 0x126   : > { %v335_v20 = vpop.permute.xlu0 %334  ;;  %v309_v24 = vpop.permute.xlu2 %308 }
 0x127   : > { %v333_v21 = vpop.permute.xlu1 %332  ;;  %v312_v59 = vsel %vm2409_vm5, %v307_v12, %v309_v24  ;;  %v404_v12 = vsel %vm402_vm12, %v250_v63, 0 }
 0x128   : > { %v337_v23 = vsel %vm336_vm1, %v331_v16, %v333_v21  ;;  %v338_v45 = vsel %vm336_vm1, %v333_v21, %v335_v20  ;;  %v316_v2 = vsel %vm2015_vm9, %v312_v59, 0.0 }
 0x129   : > { %v341_v25 = vsel %vm1986_vm3, %v337_v23, 0.0  ;;  %v342_v54 = vsel %vm2015_vm9, %v338_v45, 0.0 }
 0x12a   : > { %v400_v26 = vsel %vm2408_vm2, %v341_v25, 1.0  ;;  %v401_v61 = vsel %vm2408_vm2, %v342_v54, 1.0 }
 0x12b   : > { %v408_v27 = vsel %vm406_vm4, %v400_v26, 0  ;;  %v411_v7 = vsel %vm406_vm4, %v401_v61, 0  ;;  %v2082_v26 = vand.u32 4294901760, %v404_v12 }
 0x12c   : > { %v1995_v28 = vand.u32 4294901760, %v408_v27 }
 0x12d   : > { %v2098_v38 = vsub.f32 %v404_v12, %v2082_v26 }
 0x12e   : > { %425 = vmatpush.msra.mxu0 %v1995_v28  ;;  %533 = vmatpush.msra.mxu3 %v1995_v28  ;;  %v1999_v29 = vpop.permute.xlu0 %278  ;;  %v2002_v30 = vsub.f32 %v408_v27, %v1995_v28  ;;  %v381_v34 = vpop.permute.xlu2 %380  ;;  %v377_v27 = vrot.slane %v316_v2, 4 }
 0x12f   : > { %v320_v31 = vpop.permute.xlu1 %319 }
 0x130   : > { %502 = vmatpush.msra.mxu2 %v2002_v30  ;;  %v456_v32 = vand.u32 4294901760, %v2002_v30  ;;  %v324_v42 = vsel %vm2407_vm6, %v318_v15, %v320_v31 }
 0x131   : > { %v328_v49 = vsel %vm2020_vm10, %v324_v42, 0.0 }
 0x132   : > { %v457_v33 = vsub.f32 %v2002_v30, %v456_v32 }
 0x134   : > { %v458_v35 = vand.u32 4294901760, %v457_v33 }
 0x136   : > { %459 = vmatpush.msra.mxu1 %v458_v35  ;;  %v322_v36 = vpop.permute.xlu0 %321  ;;  %v2013_v43 = vpop.permute.xlu2 %348 }
 0x137   : > { %v292_v37 = vpop.permute.xlu1 %291  ;;  %v325_v8 = vsel %vm2407_vm6, %v320_v31, %v322_v36 }
 0x138   : > { %v298_v57 = vsel %vm297_vm11, %v292_v37, %v1982_v13  ;;  %v329_v23 = vsel %vm2071_vm14, %v325_v8, 0.0 }
 0x139   : > { %v302_v0 = vsel %vm2020_vm10, %v298_v57, 0.0 }
 0x13a   : > { %v359_v14 = vrot.slane %v302_v0, 4 }
 0x13e   : > { %v383_v47 = vpop.permute.xlu0 %382  ;;  %v368_v9 = vpop.permute.xlu2 %367 }
 0x13f   : > { %v364_v50 = vpop.permute.xlu1 %363  ;;  %v387_v51 = vsel %vm2405_vm7, %v381_v34, %v383_v47  ;;  %v371_v24 = vsel %vm2406_vm8, %v1984_v17, %v368_v9 }
 0x140   : > { %v370_v52 = vsel %vm2406_vm8, %v364_v50, %v1984_v17  ;;  %v398_v53 = vsel %vm2408_vm2, %v328_v49, %v387_v51  ;;  %v397_v35 = vsel %vm2408_vm2, %v371_v24, %v377_v27 }
 0x141   : > { %v396_v55 = vsel %vm2408_vm2, %v370_v52, %v376_v48  ;;  %v2033_v56 = vand.u32 4294901760, %v398_v53  ;;  %v2105_v42 = vand.u32 4294901760, %v397_v35  ;;  %v2117_v52 = vand.u32 4294901760, %v2098_v38 }
 0x142   : > { %v2037_v58 = vand.u32 4294901760, %v396_v55 }
 0x143   : > { %427 = vmatpush.msra.mxu0 %v2033_v56  ;;  %535 = vmatpush.msra.mxu3 %v2033_v56  ;;  %v2043_v60 = vsub.f32 %v398_v53, %v2033_v56  ;;  %v437_v63 = vsub.f32 %v2098_v38, %v2117_v52 }
 0x144   : > { %v2047_v62 = vsub.f32 %v396_v55, %v2037_v58  ;;  %v2123_v55 = vsub.f32 %v397_v35, %v2105_v42 }
 0x145   : > { %429 = vmatpush.msra.mxu0 %v2037_v58  ;;  %505 = vmatpush.msra.mxu2 %v2043_v60  ;;  %v462_v1 = vand.u32 4294901760, %v2043_v60 }
 0x146   : > { %537 = vmatpush.msra.mxu3 %v2037_v58  ;;  %v385_v3 = vpop.permute.xlu0 %384  ;;  %v468_v5 = vand.u32 4294901760, %v2047_v62  ;;  %v666_v9 = vand.u32 4294901760, %v2123_v55 }
 0x147   : > { %v281_v10 = vpop.permute.xlu1 %280  ;;  %508 = vmatpush.msra.mxu2 %v2047_v62  ;;  %v463_v11 = vsub.f32 %v2043_v60, %v462_v1  ;;  %v388_v16 = vsel %vm2405_vm7, %v383_v47, %v385_v3 }
 0x148   : > { %v285_v15 = vsel %vm284_vm13, %v1999_v29, %v281_v10  ;;  %v469_v18 = vsub.f32 %v2047_v62, %v468_v5  ;;  %v2084_v29 = vand.u32 4294901760, %v411_v7  ;;  %v399_v33 = vsel %vm2408_vm2, %v329_v23, %v388_v16 }
 0x149   : > { %v289_v20 = vsel %vm1986_vm3, %v285_v15, 0.0  ;;  %v464_v21 = vand.u32 4294901760, %v463_v11  ;;  %v2095_v36 = vand.u32 4294901760, %v399_v33  ;;  %v438_v15 = vand.u32 4294901760, %v437_v63 }
 0x14a   : > { %v394_v25 = vsel %vm2408_vm2, %v289_v20, %v359_v14  ;;  %v470_v34 = vand.u32 4294901760, %v469_v18  ;;  %v2101_v39 = vsub.f32 %v411_v7, %v2084_v29  ;;  %v270_v7 = vsel %vm2020_vm10, %v1938_v4, 0.0 }
 0x14b   : > { %v2086_v31 = vand.u32 4294901760, %v394_v25  ;;  %465 = vmatpush.msra.mxu1 %v464_v21  ;;  %v2114_v50 = vsub.f32 %v399_v33, %v2095_v36  ;;  %v667_v20 = vsub.f32 %v2123_v55, %v666_v9 }
 0x14d   : > { %431 = vmatpush.msra.mxu0 %v2086_v31  ;;  %539 = vmatpush.msra.mxu3 %v2086_v31  ;;  %v2093_v17 = vsub.f32 %v394_v25, %v2086_v31  ;;  %v660_v61 = vand.u32 4294901760, %v2114_v50  ;;  %v271_v25 = vsel %vm2071_vm14, %v1947_v6, 0.0 }
 0x14e   : > { %471 = vmatpush.msra.mxu1 %v470_v34  ;;  %v283_v37 = vpop.permute.xlu0 %282 }
 0x14f   : > { %v296_v40 = vpop.permute.xlu1 %295  ;;  %511 = vmatpush.msra.mxu2 %v2093_v17  ;;  %v474_v41 = vand.u32 4294901760, %v2093_v17  ;;  %v286_v47 = vsel %vm284_vm13, %v281_v10, %v283_v37  ;;  %v661_v12 = vsub.f32 %v2114_v50, %v660_v61 }
 0x150   : > { %v299_v45 = vsel %vm297_vm11, %v1982_v13, %v296_v40  ;;  %v290_v53 = vsel %vm2015_vm9, %v286_v47, 0.0  ;;  %v654_v13 = vand.u32 4294901760, %v2101_v39 }
 0x151   : > { %v303_v48 = vsel %vm2071_vm14, %v299_v45, 0.0  ;;  %v475_v49 = vsub.f32 %v2093_v17, %v474_v41  ;;  %v662_v4 = vand.u32 4294901760, %v661_v12 }
 0x152   : > { %v360_v51 = vrot.slane %v303_v48, 4  ;;  %v655_v3 = vsub.f32 %v2101_v39, %v654_v13 }
 0x153   : > { %v476_v54 = vand.u32 4294901760, %v475_v49 }
 0x154   : > { %v395_v57 = vsel %vm2408_vm2, %v290_v53, %v360_v51  ;;  %v656_v16 = vand.u32 4294901760, %v655_v3 }
 0x155   : > { %v2126_v59 = vand.u32 4294901760, %v395_v57  ;;  %477 = vmatpush.msra.mxu1 %v476_v54 }
 0x157   : > { %v2132_v0 = vsub.f32 %v395_v57, %v2126_v59  ;;  %v347_v2 = vpop.permute.xlu1 %346 }
 0x158   : > { %v353_v8 = vsel %vm352_vm15, %v347_v2, %v2013_v43 }
 0x159   : > { %v392_v10 = vsel %vm2408_vm2, %v270_v7, %v353_v8  ;;  %v672_v14 = vand.u32 4294901760, %v2132_v0 }
 0x15a   : > { %v432_v11 = vand.u32 4294901760, %v392_v10 }
 0x15b   : > { %v673_v21 = vsub.f32 %v2132_v0, %v672_v14 }
 0x15c   : > { %433 = vmatpush.msra.mxu0 %v432_v11  ;;  %541 = vmatpush.msra.mxu3 %v432_v11  ;;  %v479_v18 = vsub.f32 %v392_v10, %v432_v11 }
 0x15d   : > { %439 = vmatmul.f32.vlgmr.msra.gmra.mxu0 %v438_v15  ;;  %545 = vmatmul.f32.vlgmr.msra.gmra.mxu3 %v2117_v52 }
 0x15e   : > { %563 = vmatpush.msrb.mxu0 %v456_v32  ;;  %657 = vmatpush.msrb.mxu3 %v656_v16  ;;  %v480_v23 = vand.u32 4294901760, %v479_v18  ;;  %v668_v32 = vand.u32 4294901760, %v667_v20 }
 0x15f   : > { %514 = vmatpush.msra.mxu2 %v479_v18  ;;  %v351_v24 = vpop.permute.xlu1 %350 }
 0x160   : > { %567 = vmatpush.msrb.mxu0 %v462_v1  ;;  %v354_v30 = vsel %vm352_vm15, %v2013_v43, %v351_v24  ;;  %663 = vmatpush.msrb.mxu3 %v662_v4  ;;  %v481_v27 = vsub.f32 %v479_v18, %v480_v23  ;;  %v674_v1 = vand.u32 4294901760, %v673_v21 }
 0x161   : > { %623 = vmatpush.msrb.mxu2 %v2084_v29  ;;  %v393_v33 = vsel %vm2408_vm2, %v271_v25, %v354_v30 }
 0x162   : > { %517 = vmatmul.f32.vlgmr.msra.gmra.mxu2 %v2098_v38  ;;  %571 = vmatpush.msrb.mxu0 %v468_v5  ;;  %v630_v60 = vand.u32 4294901760, %v393_v33  ;;  %v482_v34 = vand.u32 4294901760, %v481_v27 }
 0x163   : > { %625 = vmatpush.msrb.mxu2 %v2095_v36  ;;  %669 = vmatpush.msrb.mxu3 %v668_v32 }
 0x164   : > { %575 = vmatpush.msrb.mxu0 %v474_v41  ;;  %v677_v6 = vsub.f32 %v393_v33, %v630_v60  ;;  %483 = vmatpush.msra.mxu1 %v482_v34 }
 0x165   : > { %627 = vmatpush.msrb.mxu2 %v2105_v42  ;;  %675 = vmatpush.msrb.mxu3 %v674_v1 }
 0x166   : > { %579 = vmatpush.msrb.mxu0 %v480_v23  ;;  %597 = vmatpush.msrb.mxu1 %v1995_v28  ;;  %v678_v43 = vand.u32 4294901760, %v677_v6 }
 0x167   : > { %629 = vmatpush.msrb.mxu2 %v2126_v59  ;;  %485 = vmatmul.f32.vlgmr.msra.gmra.mxu1 %v2082_v26 }
 0x168   : > { %700 = vmatpush.msra.mxu0 %v2101_v39  ;;  %599 = vmatpush.msrb.mxu1 %v2033_v56  ;;  %v679_v62 = vsub.f32 %v677_v6, %v678_v43 }
 0x169   : > { %631 = vmatpush.msrb.mxu2 %v630_v60  ;;  %581 = vmatmul.f32.vlgmr.msrb.gmra.mxu0 %v2082_v26 }
 0x16a   : > { %703 = vmatpush.msra.mxu0 %v2114_v50  ;;  %601 = vmatpush.msrb.mxu1 %v2037_v58  ;;  %v680_v5 = vand.u32 4294901760, %v679_v62 }
 0x16b   : > { %761 = vmatpush.msra.mxu2 %v654_v13 }
 0x16c   : > { %637 = vmatmul.f32.vlgmr.msrb.gmra.mxu2 %v438_v15  ;;  %706 = vmatpush.msra.mxu0 %v2123_v55 }
 0x16d   : > { %765 = vmatpush.msra.mxu2 %v660_v61  ;;  %603 = vmatpush.msrb.mxu1 %v2086_v31 }
 0x16e   : > { %681 = vmatpush.msrb.mxu3 %v680_v5  ;;  %709 = vmatpush.msra.mxu0 %v2132_v0 }
 0x16f   : > { %769 = vmatpush.msra.mxu2 %v666_v9  ;;  %605 = vmatpush.msrb.mxu1 %v432_v11 }
 0x170   : > { %683 = vmatmul.f32.vlgmr.msrb.gmra.mxu3 %v2082_v26  ;;  %607 = vmatmul.f32.vlgmr.msrb.gmra.mxu1 %v2082_v26 }
 0x171   : > { %795 = vmatpush.msra.mxu3 %v2084_v29  ;;  %712 = vmatpush.msra.mxu0 %v677_v6 }
 0x172   : > { %731 = vmatpush.msra.mxu1 %v2084_v29  ;;  %773 = vmatpush.msra.mxu2 %v672_v14 }
 0x173   : > { %797 = vmatpush.msra.mxu3 %v2095_v36  ;;  %715 = vmatmul.f32.vlgmr.msra.gmra.mxu0 %v2098_v38 }
 0x174   : > { %733 = vmatpush.msra.mxu1 %v2095_v36  ;;  %777 = vmatpush.msra.mxu2 %v678_v43 }
 0x175   : > { %799 = vmatpush.msra.mxu3 %v2105_v42  ;;  %779 = vmatmul.f32.vlgmr.msra.gmra.mxu2 %v2082_v26 }
 0x176   : > { %735 = vmatpush.msra.mxu1 %v2105_v42 }
 0x177   : > { %801 = vmatpush.msra.mxu3 %v2126_v59 }
 0x178   : > { %737 = vmatpush.msra.mxu1 %v2126_v59 }
 0x179   : > { %803 = vmatpush.msra.mxu3 %v630_v60 }
 0x17a   : > { %739 = vmatpush.msra.mxu1 %v630_v60  ;;  %805 = vmatmul.f32.vlgmr.msra.gmra.mxu3 %v2082_v26 }
 0x17b   : > { %743 = vmatmul.f32.vlgmr.msra.gmra.mxu1 %v2117_v52 }
 0x1da   : > { %v440_v28 = vpop.f32.mrf.mxu0 }
 0x1e0   : > { %v546_v35 = vpop.f32.mrf.mxu3 }
 0x1e4   : > { %v486_v56 = vpop.f32.mrf.mxu1 }
 0x1e5   : > { %v518_v58 = vpop.f32.mrf.mxu2  ;;  %v487_v29 = vadd.f32 %v486_v56, %v440_v28 }
 0x1e6   : > { %v582_v36 = vpop.f32.mrf.mxu0 }
 0x1e7   : > { %v519_v31 = vadd.f32 %v518_v58, %v487_v29 }
 0x1e9   : > { %v547_v17 = vadd.f32 %v546_v35, %v519_v31 }
 0x1eb   : > { %v583_v37 = vadd.f32 %v582_v36, %v547_v17 }
 0x1ed   : > { %v608_v38 = vpop.f32.mrf.mxu1 }
 0x1ee   : > { %v609_v39 = vadd.f32 %v608_v38, %v583_v37 }
 0x1ef   : > { %v638_v40 = vpop.f32.mrf.mxu2 }
 0x1f0   : > { %v1529_v41 = vmul.f32 -1.442695, %v609_v39  ;;  %v716_v45 = vpop.f32.mrf.mxu0 }
 0x1f2   : > { %1616 = vpow2.f32 %v1529_v41 }
 0x1f3   : > { %v684_v42 = vpop.f32.mrf.mxu3 }
 0x1f4   : > { %v685_v47 = vadd.f32 %v684_v42, %v638_v40 }
 0x1f6   : > { %v717_v26 = vadd.f32 %v716_v45, %v685_v47 }
 0x1f8   : > { %v1617_v48 = vpop.eup %1616  ;;  %v744_v49 = vpop.f32.mrf.mxu1 }
 0x1f9   : > { %v815_v50 = vadd.f32 1.0, %v1617_v48  ;;  %v745_v51 = vadd.f32 %v744_v49, %v717_v26  ;;  %v780_v52 = vpop.f32.mrf.mxu2 }
 0x1fb   : > { %1618 = vrcp.f32 %v815_v50  ;;  %v781_v53 = vadd.f32 %v780_v52, %v745_v51  ;;  %v828_v63 = vand.u32 2147483648, %v815_v50  ;;  %v826_v2 = vand.u32 2147483647, %v815_v50 }
 0x1fc   : > { %vm822_vm12 = vweird.f32 %v815_v50 }
 0x1fd   : > { %v806_v54 = vpop.f32.mrf.mxu3  ;;  %v829_v8 = vor.u32 1.1754944e-38, %v828_v63  ;;  %vm827_vm8 = vcmp.eq.f32.partialorder %v826_v2, 8.507059e+37 }
 0x1fe   : > { %v807_v13 = vadd.f32 %v806_v54, %v781_v53 }
 0x200   : > { %v1530_v55 = vmul.f32 -1.442695, %v807_v13 }
 0x201   : > { %v1619_v57 = vpop.eup %1618 }
 0x202   : > { %v818_v59 = vmul.f32 %v1619_v57, %v815_v50  ;;  %1620 = vpow2.f32 %v1530_v55  ;;  %vm823_vm4 = vweird.f32 %v1619_v57 }
 0x203   : > { %vm824_vm7 = vmor %vm822_vm12, %vm823_vm4  ;;  %vm2425_vm12 = vcmask 785408  }
 0x204   : > { %v819_v61 = vsub.f32 1.0, %v818_v59 }
 0x206   : > { %v820_v0 = vmul.f32 %v1619_v57, %v819_v61  ;;  %v849_v61 = vld [vmem:[#allocation7] sm:$0xf] }
 0x208   : > { %v1621_v3 = vpop.eup %1620  ;;  %v821_v7 = vadd.f32 %v1619_v57, %v820_v0 }
 0x209   : > { %v816_v9 = vadd.f32 1.0, %v1621_v3 }
 0x20a   : > { %v825_v10 = vsel %vm824_vm7, %v1619_v57, %v821_v7  ;;  %vm2424_vm7 = vcmask 1043456  }
 0x20b   : > { %v830_v11 = vsel %vm827_vm8, %v829_v8, %v825_v10  ;;  %1622 = vrcp.f32 %v816_v9  ;;  %v843_v18 = vand.u32 2147483648, %v816_v9  ;;  %v841_v4 = vand.u32 2147483647, %v816_v9 }
 0x20c   : > { %v847_v12 = vmul.f32 %v830_v11, %v609_v39  ;;  %vm837_vm2 = vweird.f32 %v816_v9  ;;  %vm991_vm8 = vcmask 1045504  }
 0x20d   : > { %v844_v23 = vor.u32 1.1754944e-38, %v843_v18  ;;  %vm842_vm4 = vcmp.eq.f32.partialorder %v841_v4, 8.507059e+37 }
 0x20e   : > { %852 = vrot.lane.b32.xlu2 %v847_v12, %s1796_s23 }
 0x211   : > { %v1623_v14 = vpop.eup %1622 }
 0x212   : > { %v833_v15 = vmul.f32 %v1623_v14, %v816_v9  ;;  %vm838_vm6 = vweird.f32 %v1623_v14 }
 0x213   : > { %vm839_vm5 = vmor %vm837_vm2, %vm838_vm6  ;;  %vm1006_vm2 = vcmask 1042432   ;;  %vm2423_vm6 = vcmask 900096  }
 0x214   : > { %v834_v16 = vsub.f32 1.0, %v833_v15 }
 0x216   : > { %v835_v20 = vmul.f32 %v1623_v14, %v834_v16 }
 0x218   : > { %v836_v21 = vadd.f32 %v1623_v14, %v835_v20 }
 0x21a   : > { %v840_v24 = vsel %vm839_vm5, %v1623_v14, %v836_v21  ;;  %vm1002_vm5 = vcmask 154624  }
 0x21b   : > { %v845_v25 = vsel %vm842_vm4, %v844_v23, %v840_v24  ;;  %v1004_v9 = vsel %vm1002_vm5, %v849_v61, 0  ;;  %vm2426_vm4 = vcmask 908288  }
 0x21c   : > { %v848_v30 = vmul.f32 %v845_v25, %v807_v13  ;;  %v2277_v15 = vand.u32 4294901760, %v1004_v9  ;;  %vm2431_vm5 = vmmov %vm2426_vm4 }
 0x21e   : > { %854 = vrot.lane.b32.xlu0 %v848_v30, %s1796_s23  ;;  %s1736_s23 = sshra.s32 %s1427_s20, 4  ;;  %s1737_s23 = int_to_ptr.hbm [resolvable:$true] %s1736_s23 }
 0x21f   : > { %p1743_p9 = scmp.lt.s32.totalorder %s1737_s23, %s2404_s3 }
 0x268   : > { %v853_v32 = vpop.permute.xlu2 %852 }
 0x269   : > { %v2191_v27 = vsel %vm259_vm0, 0.0, %v853_v32 }
 0x26a   : > { %914 = vrot.lane.b32.xlu2 %v2191_v27, %s1799_s24  ;;  %890 = vrot.lane.b32.xlu1 %v2191_v27, %s1798_s22  ;;  %v926_v33 = vrot.slane %v2191_v27, 6  ;;  %v973_v60 = vrot.slane %v2191_v27, 2  ;;  %v862_v63 = vsel %vm2020_vm10, %v2191_v27, 0.0 }
 0x26b   : > { %902 = vrot.lane.b32.xlu0 %v2191_v27, %s1797_s18 }
 0x272   : > { %878 = vrot.lane.b32.xlu2 %v2191_v27, %s1801_s26  ;;  %866 = vrot.lane.b32.xlu1 %v2191_v27, %s1800_s25 }
 0x273   : > { %951 = vrot.lane.b32.xlu0 %v2191_v27, %s1802_s27  ;;  %v2289_v27 = vsub.f32 %v1004_v9, %v2277_v15 }
 0x27a   : > { %929 = vrot.lane.b32.xlu1 %v926_v33, %s1804_s29 }
 0x27b   : > { %976 = vrot.lane.b32.xlu0 %v973_v60, %s1803_s28 }
 0x290   : > { %v855_v1 = vpop.permute.xlu0 %854 }
 0x291   : > { %v2210_v34 = vsel %vm259_vm0, %v853_v32, %v855_v1  ;;  %v861_v6 = vsel %vm259_vm0, %v855_v1, 0.0  ;;  %vm986_vm0 = vcmask 1041408  }
 0x292   : > { %916 = vrot.lane.b32.xlu0 %v2210_v34, %s1799_s24  ;;  %904 = vrot.lane.b32.xlu1 %v2210_v34, %s1797_s18  ;;  %v974_v43 = vrot.slane %v2210_v34, 2  ;;  %v975_v62 = vrot.slane %v861_v6, 2  ;;  %v927_v5 = vrot.slane %v2210_v34, 6  ;;  %v928_v28 = vrot.slane %v861_v6, 6 }
 0x293   : > { %892 = vrot.lane.b32.xlu2 %v2210_v34, %s1798_s22 }
 0x29a   : > { %880 = vrot.lane.b32.xlu0 %v2210_v34, %s1801_s26  ;;  %953 = vrot.lane.b32.xlu1 %v2210_v34, %s1802_s27 }
 0x29b   : > { %868 = vrot.lane.b32.xlu2 %v2210_v34, %s1800_s25 }
 0x2a2   : > { %906 = vrot.lane.b32.xlu0 %v861_v6, %s1797_s18  ;;  %918 = vrot.lane.b32.xlu1 %v861_v6, %s1799_s24  ;;  %s1738_s18 = scalar_lea.hbm %s1737_s23, 8 }
 0x2a3   : > { %894 = vrot.lane.b32.xlu2 %v861_v6, %s1798_s22  ;;  %p1739_p1 = scmp.ne.s32.totalorder %s1737_s23, %s1738_s18  ;;  %p1744_p2 = scmp.lt.s32.totalorder %s1742_s17, %s1738_s18 }
 0x2a5   : > { %p1740_p4 = pnand %p1739_p1, %p1891_p3  ;;  %p1745_p10 = por %p1744_p2, %p1743_p9 }
 0x2a7   : > { %p1741_p8 = pneg %p1740_p4 }
 0x2a9   : > { %p1746_p11 = pnand %p1745_p10, %p1741_p8 }
 0x2aa   : > { %955 = vrot.lane.b32.xlu0 %v861_v6, %s1802_s27  ;;  %978 = vrot.lane.b32.xlu1 %v974_v43, %s1803_s28 }
 0x2ab   : > { %870 = vrot.lane.b32.xlu2 %v861_v6, %s1800_s25 }
 0x2b2   : > { %980 = vrot.lane.b32.xlu0 %v975_v62, %s1803_s28  ;;  %882 = vrot.lane.b32.xlu1 %v861_v6, %s1801_s26 }
 0x2b3   : > { %931 = vrot.lane.b32.xlu2 %v927_v5, %s1804_s29 }
 0x2bb   : > { %933 = vrot.lane.b32.xlu2 %v928_v28, %s1804_s29 }
 0x2c4   : > { %v915_v56 = vpop.permute.xlu2 %914 }
 0x2cc   : > { %v879_v58 = vpop.permute.xlu2 %878 }
 0x2dc   : > { %v891_v29 = vpop.permute.xlu1 %890 }
 0x2dd   : > { %v903_v31 = vpop.permute.xlu0 %902 }
 0x2e4   : > { %v867_v17 = vpop.permute.xlu1 %866 }
 0x2e5   : > { %v952_v36 = vpop.permute.xlu0 %951 }
 0x2ec   : > { %v930_v38 = vpop.permute.xlu1 %929 }
 0x2ed   : > { %v893_v35 = vpop.permute.xlu2 %892  ;;  %v2239_v39 = vpop.permute.xlu0 %976 }
 0x2ee   : > { %v896_v10 = vsel %vm2423_vm6, %v891_v29, %v893_v35 }
 0x2ef   : > { %v900_v16 = vsel %vm1986_vm3, %v896_v10, 0.0 }
 0x2f0   : > { %v963_v25 = vrot.slane %v900_v16, 6 }
 0x2f5   : > { %v2237_v37 = vpop.permute.xlu2 %868 }
 0x2f6   : > { %v872_v51 = vsel %vm284_vm13, %v867_v17, %v2237_v37 }
 0x2f7   : > { %v876_v13 = vsel %vm1986_vm3, %v872_v51, 0.0 }
 0x2f8   : > { %v941_v8 = vrot.slane %v876_v13, 4 }
 0x2fd   : > { %v895_v40 = vpop.permute.xlu2 %894 }
 0x304   : > { %v905_v41 = vpop.permute.xlu1 %904  ;;  %v917_v42 = vpop.permute.xlu0 %916 }
 0x305   : > { %v2241_v45 = vpop.permute.xlu2 %870  ;;  %v920_v47 = vsel %vm336_vm1, %v915_v56, %v917_v42  ;;  %v908_v4 = vsel %vm2425_vm12, %v903_v31, %v905_v41  ;;  %v2306_v56 = vand.u32 4294901760, %v2289_v27 }
 0x306   : > { %v924_v26 = vsel %vm1986_vm3, %v920_v47, 0.0  ;;  %vm2427_vm3 = vmmov %vm2423_vm6  ;;  %v912_v33 = vsel %vm2020_vm10, %v908_v4, 0.0 }
 0x307   : > { %v1000_v48 = vsel %vm986_vm0, %v924_v26, 1.0  ;;  %v897_v22 = vsel %vm2427_vm3, %v893_v35, %v895_v40  ;;  %v969_v5 = vrot.slane %v912_v33, 4 }
 0x308   : > { %v1008_v49 = vsel %vm1006_vm2, %v1000_v48, 0  ;;  %v901_v62 = vsel %vm2015_vm9, %v897_v22, 0.0 }
 0x309   : > { %v2248_v50 = vand.u32 4294901760, %v1008_v49 }
 0x30b   : > { %v2253_v52 = vsub.f32 %v1008_v49, %v2248_v50  ;;  %1027 = vmatpush.msrb.mxu0 %v2248_v50  ;;  %1119 = vmatpush.msrb.mxu3 %v2248_v50  ;;  %v873_v49 = vsel %vm284_vm13, %v2237_v37, %v2241_v45 }
 0x30c   : > { %v954_v53 = vpop.permute.xlu1 %953  ;;  %v2257_v54 = vpop.permute.xlu0 %880 }
 0x30d   : > { %v932_v55 = vpop.permute.xlu2 %931  ;;  %v884_v57 = vsel %vm297_vm11, %v879_v58, %v2257_v54  ;;  %1092 = vmatpush.msrb.mxu2 %v2253_v52  ;;  %v1056_v59 = vand.u32 4294901760, %v2253_v52  ;;  %v957_v30 = vsel %vm2426_vm4, %v952_v36, %v954_v53 }
 0x30e   : > { %v935_v0 = vsel %vm352_vm15, %v930_v38, %v932_v55  ;;  %v888_v2 = vsel %vm2020_vm10, %v884_v57, 0.0  ;;  %v994_v43 = vsel %vm986_vm0, %v957_v30, %v963_v25  ;;  %vm2429_vm10 = vcmask 777216  }
 0x30f   : > { %v987_v3 = vsel %vm986_vm0, %v862_v63, %v935_v0  ;;  %v1057_v7 = vsub.f32 %v2253_v52, %v1056_v59  ;;  %v947_v11 = vrot.slane %v888_v2, 2  ;;  %v964_v38 = vrot.slane %v901_v62, 6 }
 0x310   : > { %v989_v14 = vsel %vm2424_vm7, %v987_v3, %v941_v8  ;;  %v877_v0 = vsel %vm2015_vm9, %v873_v49, 0.0  ;;  %v863_v2 = vsel %vm2071_vm14, %v2210_v34, 0.0 }
 0x311   : > { %v1058_v12 = vand.u32 4294901760, %v1057_v7  ;;  %v992_v21 = vsel %vm991_vm8, %v989_v14, %v947_v11  ;;  %v942_v11 = vrot.slane %v877_v0, 4 }
 0x312   : > { %v2295_v1 = vand.u32 4294901760, %v992_v21 }
 0x313   : > { %1059 = vmatpush.msrb.mxu1 %v1058_v12 }
 0x314   : > { %v919_v18 = vpop.permute.xlu1 %918  ;;  %v907_v20 = vpop.permute.xlu0 %906  ;;  %v1067_v31 = vsub.f32 %v992_v21, %v2295_v1 }
 0x315   : > { %v921_v23 = vsel %vm336_vm1, %v917_v42, %v919_v18  ;;  %vm2428_vm1 = vmmov %vm2425_vm12  ;;  %v934_v40 = vpop.permute.xlu2 %933 }
 0x316   : > { %v925_v24 = vsel %vm2015_vm9, %v921_v23, 0.0  ;;  %v909_v46 = vsel %vm2428_vm1, %v905_v41, %v907_v20  ;;  %v1068_v51 = vand.u32 4294901760, %v1067_v31  ;;  %v936_v13 = vsel %vm352_vm15, %v932_v55, %v934_v40  ;;  %vm2433_vm9 = vmmov %vm2429_vm10 }
 0x317   : > { %v1001_v32 = vsel %vm986_vm0, %v925_v24, 1.0  ;;  %v913_v41 = vsel %vm2071_vm14, %v909_v46, 0.0  ;;  %v988_v55 = vsel %vm986_vm0, %v863_v2, %v936_v13 }
 0x318   : > { %v1011_v60 = vsel %vm1006_vm2, %v1001_v32, 0  ;;  %vm2430_vm2 = vmmov %vm2424_vm7  ;;  %v970_v63 = vrot.slane %v913_v41, 4  ;;  %v1069_v8 = vsub.f32 %v1067_v31, %v1068_v51 }
 0x319   : > { %v2297_v6 = vand.u32 4294901760, %v1011_v60  ;;  %v996_v17 = vsel %vm2430_vm2, %v994_v43, %v969_v5  ;;  %vm2432_vm13 = vmmov %vm2430_vm2 }
 0x31a   : > { %v1070_v19 = vand.u32 4294901760, %v1069_v8  ;;  %vm2435_vm3 = vmmov %vm2430_vm2 }
 0x31b   : > { %v2303_v28 = vsub.f32 %v1011_v60, %v2297_v6 }
 0x31c   : > { %v979_v58 = vpop.permute.xlu1 %978  ;;  %v956_v29 = vpop.permute.xlu0 %955 }
 0x31d   : > { %v982_v35 = vsel %vm2429_vm10, %v2239_v39, %v979_v58  ;;  %v1228_v36 = vand.u32 4294901760, %v2303_v28  ;;  %v958_v47 = vsel %vm2431_vm5, %v954_v53, %v956_v29  ;;  %v1035_v39 = vsub.f32 %v2289_v27, %v2306_v56 }
 0x31e   : > { %v998_v42 = vsel %vm991_vm8, %v996_v17, %v982_v35  ;;  %v995_v53 = vsel %vm986_vm0, %v958_v47, %v964_v38 }
 0x31f   : > { %v1028_v26 = vand.u32 4294901760, %v998_v42  ;;  %v1229_v48 = vsub.f32 %v2303_v28, %v1228_v36  ;;  %v1036_v45 = vand.u32 4294901760, %v1035_v39  ;;  %v997_v44 = vsel %vm2432_vm13, %v995_v53, %v970_v63 }
 0x321   : > { %1029 = vmatpush.msrb.mxu0 %v1028_v26  ;;  %1121 = vmatpush.msrb.mxu3 %v1028_v26  ;;  %v1061_v57 = vsub.f32 %v998_v42, %v1028_v26  ;;  %v1230_v61 = vand.u32 4294901760, %v1229_v48 }
 0x323   : > { %1031 = vmatpush.msrb.mxu0 %v2295_v1  ;;  %1095 = vmatpush.msrb.mxu2 %v1061_v57  ;;  %v1062_v37 = vand.u32 4294901760, %v1061_v57 }
 0x324   : > { %1123 = vmatpush.msrb.mxu3 %v2295_v1  ;;  %v883_v3 = vpop.permute.xlu1 %882  ;;  %v981_v7 = vpop.permute.xlu0 %980  ;;  %1037 = vmatmul.f32.vlgmr.msrb.gmra.mxu0 %v1036_v45 }
 0x325   : > { %1147 = vmatpush.msra.mxu0 %v1056_v59  ;;  %v885_v34 = vsel %vm297_vm11, %v2257_v54, %v883_v3  ;;  %v983_v9 = vsel %vm2433_vm9, %v979_v58, %v981_v7  ;;  %1098 = vmatpush.msrb.mxu2 %v1067_v31  ;;  %v1063_v10 = vsub.f32 %v1061_v57, %v1062_v37  ;;  %vm2434_vm11 = vmmov %vm2430_vm2 }
 0x326   : > { %1231 = vmatpush.msra.mxu3 %v1230_v61  ;;  %v889_v12 = vsel %vm2071_vm14, %v885_v34, 0.0  ;;  %v999_v14 = vsel %vm991_vm8, %v997_v44, %v983_v9  ;;  %1101 = vmatmul.f32.vlgmr.msrb.gmra.mxu2 %v2289_v27  ;;  %v990_v16 = vsel %vm2434_vm11, %v988_v55, %v942_v11 }
 0x327   : > { %1151 = vmatpush.msra.mxu0 %v1062_v37  ;;  %1199 = vmatpush.msra.mxu2 %v2297_v6  ;;  %v948_v52 = vrot.slane %v889_v12, 2  ;;  %v1200_v59 = vand.u32 4294901760, %v999_v14  ;;  %v1064_v54 = vand.u32 4294901760, %v1063_v10 }
 0x328   : > { %1127 = vmatmul.f32.vlgmr.msrb.gmra.mxu3 %v2306_v56 }
 0x329   : > { %1155 = vmatpush.msra.mxu0 %v1068_v51  ;;  %v993_v18 = vsel %vm991_vm8, %v990_v16, %v948_v52  ;;  %1065 = vmatpush.msrb.mxu1 %v1064_v54  ;;  %v1233_v20 = vsub.f32 %v999_v14, %v1200_v59  ;;  %v1399_v14 = vld.sshfl [vmem:[#allocation1 + $0x8] sm:$0xff pattern:$0x75316420]  ;;  %v1398_v54 = vld.sshfl [vmem:[#allocation1] sm:$0xff pattern:$0x75316420] }
 0x32a   : > { %1201 = vmatpush.msra.mxu2 %v1200_v59  ;;  %v1202_v4 = vand.u32 4294901760, %v993_v18 }
 0x32b   : > { %1264 = vmatpush.msrb.mxu0 %v2303_v28  ;;  %1071 = vmatpush.msrb.mxu1 %v1070_v19  ;;  %v1234_v21 = vand.u32 4294901760, %v1233_v20 }
 0x32c   : > { %1073 = vmatmul.f32.vlgmr.msrb.gmra.mxu1 %v2277_v15  ;;  %v1239_v23 = vsub.f32 %v993_v18, %v1202_v4  ;;  %1203 = vmatpush.msra.mxu2 %v1202_v4 }
 0x32d   : > { %1267 = vmatpush.msrb.mxu0 %v1233_v20  ;;  %1175 = vmatpush.msra.mxu1 %v2248_v50  ;;  %v1235_v24 = vsub.f32 %v1233_v20, %v1234_v21 }
 0x32e   : > { %1319 = vmatpush.msrb.mxu2 %v1228_v36  ;;  %v1240_v25 = vand.u32 4294901760, %v1239_v23  ;;  %1157 = vmatmul.f32.vlgmr.msra.gmra.mxu0 %v2277_v15 }
 0x32f   : > { %1270 = vmatpush.msrb.mxu0 %v1239_v23  ;;  %1177 = vmatpush.msra.mxu1 %v1028_v26  ;;  %v1236_v30 = vand.u32 4294901760, %v1235_v24 }
 0x330   : > { %1323 = vmatpush.msrb.mxu2 %v1234_v21  ;;  %v1241_v32 = vsub.f32 %v1239_v23, %v1240_v25 }
 0x331   : > { %1179 = vmatpush.msra.mxu1 %v2295_v1  ;;  %1237 = vmatpush.msra.mxu3 %v1236_v30 }
 0x332   : > { %1327 = vmatpush.msrb.mxu2 %v1240_v25  ;;  %v1242_v50 = vand.u32 4294901760, %v1241_v32 }
 0x333   : > { %1291 = vmatpush.msrb.mxu1 %v2297_v6  ;;  %1209 = vmatmul.f32.vlgmr.msra.gmra.mxu2 %v1036_v45 }
 0x334   : > { %1243 = vmatpush.msra.mxu3 %v1242_v50  ;;  %1181 = vmatmul.f32.vlgmr.msra.gmra.mxu1 %v2277_v15 }
 0x335   : > { %1293 = vmatpush.msrb.mxu1 %v1200_v59  ;;  %1245 = vmatmul.f32.vlgmr.msra.gmra.mxu3 %v2277_v15 }
 0x336   : > { %1347 = vmatpush.msrb.mxu3 %v2297_v6  ;;  %1273 = vmatmul.f32.vlgmr.msrb.gmra.mxu0 %v2289_v27 }
 0x337   : > { %1295 = vmatpush.msrb.mxu1 %v1202_v4 }
 0x338   : > { %1349 = vmatpush.msrb.mxu3 %v1200_v59 }
 0x33a   : > { %1351 = vmatpush.msrb.mxu3 %v1202_v4 }
 0x33b   : > { %1329 = vmatmul.f32.vlgmr.msrb.gmra.mxu2 %v2277_v15 }
 0x33c   : > { %1299 = vmatmul.f32.vlgmr.msrb.gmra.mxu1 %v2306_v56 }
 0x33d   : > { %1353 = vmatmul.f32.vlgmr.msrb.gmra.mxu3 %v2277_v15 }
 0x3a1   : > { %v1038_v22 = vpop.f32.mrf.mxu0 }
 0x3a9   : > { %v1074_v33 = vpop.f32.mrf.mxu1  ;;  %v1102_v1 = vpop.f32.mrf.mxu2 }
 0x3aa   : > { %v1075_v60 = vadd.f32 %v1074_v33, %v1038_v22 }
 0x3ab   : > { %v1128_v43 = vpop.f32.mrf.mxu3  ;;  %v1158_v5 = vpop.f32.mrf.mxu0 }
 0x3ac   : > { %v1103_v62 = vadd.f32 %v1102_v1, %v1075_v60 }
 0x3ae   : > { %v1129_v28 = vadd.f32 %v1128_v43, %v1103_v62 }
 0x3b0   : > { %v1159_v46 = vadd.f32 %v1158_v5, %v1129_v28 }
 0x3b1   : > { %v1182_v6 = vpop.f32.mrf.mxu1 }
 0x3b2   : > { %v1183_v58 = vadd.f32 %v1182_v6, %v1159_v46 }
 0x3b3   : > { %v1274_v35 = vpop.f32.mrf.mxu0 }
 0x3b4   : > { %v1531_v27 = vmul.f32 -1.442695, %v1183_v58 }
 0x3b6   : > { %v1210_v29 = vpop.f32.mrf.mxu2  ;;  %1624 = vpow2.f32 %v1531_v27 }
 0x3b8   : > { %v1246_v31 = vpop.f32.mrf.mxu3 }
 0x3b9   : > { %v1247_v17 = vadd.f32 %v1246_v31, %v1210_v29  ;;  %v1300_v15 = vpop.f32.mrf.mxu1 }
 0x3bb   : > { %v1275_v36 = vadd.f32 %v1274_v35, %v1247_v17 }
 0x3bc   : > { %v1625_v56 = vpop.eup %1624 }
 0x3bd   : > { %v1301_v38 = vadd.f32 %v1300_v15, %v1275_v36  ;;  %v1363_v40 = vadd.f32 1.0, %v1625_v56 }
 0x3be   : > { %v1330_v42 = vpop.f32.mrf.mxu2 }
 0x3bf   : > { %v1331_v47 = vadd.f32 %v1330_v42, %v1301_v38  ;;  %1626 = vrcp.f32 %v1363_v40  ;;  %v1376_v2 = vand.u32 2147483648, %v1363_v40  ;;  %vm1370_vm15 = vweird.f32 %v1363_v40 }
 0x3c0   : > { %v1354_v41 = vpop.f32.mrf.mxu3  ;;  %v1374_v37 = vand.u32 2147483647, %v1363_v40 }
 0x3c1   : > { %v1355_v26 = vadd.f32 %v1354_v41, %v1331_v47  ;;  %v1377_v8 = vor.u32 1.1754944e-38, %v1376_v2 }
 0x3c2   : > { %vm1375_vm7 = vcmp.eq.f32.partialorder %v1374_v37, 8.507059e+37 }
 0x3c3   : > { %v1532_v48 = vmul.f32 -1.442695, %v1355_v26 }
 0x3c5   : > { %1628 = vpow2.f32 %v1532_v48  ;;  %v1627_v39 = vpop.eup %1626 }
 0x3c6   : > { %v1366_v49 = vmul.f32 %v1627_v39, %v1363_v40  ;;  %vm1371_vm14 = vweird.f32 %v1627_v39 }
 0x3c7   : > { %vm1372_vm0 = vmor %vm1370_vm15, %vm1371_vm14 }
 0x3c8   : > { %v1367_v53 = vsub.f32 1.0, %v1366_v49 }
 0x3ca   : > { %v1368_v57 = vmul.f32 %v1627_v39, %v1367_v53 }
 0x3cb   : > { %v1629_v51 = vpop.eup %1628 }
 0x3cc   : > { %v1364_v13 = vadd.f32 1.0, %v1629_v51  ;;  %v1369_v63 = vadd.f32 %v1627_v39, %v1368_v57 }
 0x3ce   : > { %1630 = vrcp.f32 %v1364_v13  ;;  %v1391_v55 = vand.u32 2147483648, %v1364_v13  ;;  %v1373_v3 = vsel %vm1372_vm0, %v1627_v39, %v1369_v63  ;;  %v1389_v7 = vand.u32 2147483647, %v1364_v13 }
 0x3cf   : > { %vm1385_vm8 = vweird.f32 %v1364_v13  ;;  %v1378_v9 = vsel %vm1375_vm7, %v1377_v8, %v1373_v3 }
 0x3d0   : > { %v1392_v10 = vor.u32 1.1754944e-38, %v1391_v55  ;;  %vm1390_vm4 = vcmp.eq.f32.partialorder %v1389_v7, 8.507059e+37  ;;  %v1395_v52 = vmul.f32 %v1378_v9, %v1183_v58 }
 0x3d2   : > { %v1402_v18 = vadd.f32 %v1398_v54, %v1395_v52 }
 0x3d4   : > { %v1631_v61 = vpop.eup %1630 }
 0x3d5   : > { %v1381_v0 = vmul.f32 %v1631_v61, %v1364_v13  ;;  %vm1386_vm6 = vweird.f32 %v1631_v61 }
 0x3d6   : > { %vm1387_vm12 = vmor %vm1385_vm8, %vm1386_vm6 }
 0x3d7   : > { %v1382_v45 = vsub.f32 1.0, %v1381_v0 }
 0x3d9   : > { %v1383_v44 = vmul.f32 %v1631_v61, %v1382_v45 }
 0x3db   : > { %v1384_v34 = vadd.f32 %v1631_v61, %v1383_v44 }
 0x3dd   : > { %v1388_v11 = vsel %vm1387_vm12, %v1631_v61, %v1384_v34 }
 0x3de   : > { %v1393_v12 = vsel %vm1390_vm4, %v1392_v10, %v1388_v11 }
 0x3df   : > { %v1396_v59 = vmul.f32 %v1393_v12, %v1355_v26 }
 0x3e1   : > { %v1403_v16 = vadd.f32 %v1399_v14, %v1396_v59 }
 0x3e3   : > { %v1406_v19 = vrot.slane %v1403_v16, 4 }
 0x3e5   : > { %v1407_v20 = vsel %vm2435_vm3, %v1402_v18, %v1406_v19 }
 0x3e6   : > { %1409 = vst [vmem:[%s217_s11] sm:$0xff] %v1407_v20 }
 0x3e7   : > { %1749 = shalt.err (!%p1746_p11)
}
 0x3e8   : > { %1550 = dma.vmem_to_hbm [thread:$0]  (%p1891_p3), %s1425_s16, 128, %s1427_s20, %s1411_s21  }
 0x3e9 PF: > { %s1438_s9 = sand.u32 1, %s1780_s12   ;;  %p2436_p12 = scmp.ge.s32.totalorder %s1792_s15, 2 }
 0x3ea   : > { %s1439_s27 = scalar_lea.sflag [#allocation4], %s1438_s9 }
 0x3eb   : > { %p1564_p13 = pnand %p2436_p12, %p1860_p6 }
 0x3ed   : > { %p1565_p0 = pneg %p1564_p13 }
 0x3ef   : > { %1775 = dma.done.wait (%p1565_p0), %s1439_s27, 128  }
 0x3f0   : > { %1777 = vsyncadd (%p1565_p0), %s1439_s27, 4294967168  ;;  %p17_p5 = scmp.ge.s32.totalorder %s1881_s4, 4   ;;  %s2437_s12 = smov %s1784_s13 }
 0x3f1   : > { %s2438_s13 = smov %s1788_s14  ;;  %s2439_s14 = smov %s1897_s8 }
 0x3f2   : > { %s2440_s15 = smov %s1881_s4  ;;  %19 = sbr.rel (!%p17_p5) target bundleno = 6 (0x6), region = 85 }
 0x3f7   :  { %1445 = vsyncpa [#allocation3], 1 }
 0x3f8   :  { %1447 = vsyncpa [#allocation3 + $0x1], 1 }
 0x3f9   :  { %1448 = vsyncpa [#allocation6], 1 }
 0x3fa   :  { %1449 = vsyncpa [#allocation4], 1 }
 0x3fb   :  { %1451 = vsyncpa [#allocation4 + $0x1], 1 }

</bundles_post_ra>
